<compile_context>
chip_gen: v5e
topology: v5e:2x2
jax: 0.10.0
libtpu: 0.0.40
codegen_flags: <defaults>
</compile_context>

<pallas_src>
import functools

import jax
import jax.numpy as jnp
from jax import lax
from jax.experimental import pallas as pl
from jax.experimental.pallas import tpu as pltpu


def _round_up(x, m):
    return ((x + m - 1) // m) * m


def _vmem_capacity_bytes():
    """Trace-time VMEM capacity query with a conservative (v7x-sized) fallback."""
    try:
        info = pltpu.get_tpu_info()
        for attr in ("vmem_capacity_bytes", "vmem_bytes", "vmem_capacity"):
            v = getattr(info, attr, None)
            if v:
                return int(v)
    except Exception:
        pass
    return 64 * 2**20


# ----------------------------------------------------------------------------
# Pass 1: row-tiled token cross-entropy -> per-tile partial sums (parallel grid)
# ----------------------------------------------------------------------------
def _ce_partial_kernel(logits_ref, tgt_ref, psum_ref, *, T, CH, BL, BL_pad):
    f32 = jnp.float32
    i = pl.program_id(0)
    nch = T // CH

    def body(c, acc):
        r0 = pl.multiple_of(c * CH, CH)
        x = logits_ref[pl.ds(r0, CH), :].astype(f32)          # [CH, V] (upcast here)
        tgt = tgt_ref[pl.ds(r0, CH), :]                       # [CH, 1] int32
        m = jnp.max(x, axis=-1, keepdims=True)
        xs = x - m                                            # single [CH,V] f32 live value
        lse_s = jnp.log(jnp.sum(jnp.exp(xs), axis=-1, keepdims=True))   # [CH,1]
        col = lax.broadcasted_iota(jnp.int32, xs.shape, 1)
        tgt_s = jnp.sum(jnp.where(col == tgt, xs, 0.0), axis=-1, keepdims=True)
        ce = lse_s - tgt_s                                    # shift m cancels exactly
        if BL_pad != BL:                                      # cheap [CH,1] column mask
            row = i * T + r0 + lax.broadcasted_iota(jnp.int32, (CH, 1), 0)
            ce = jnp.where(row < BL, ce, 0.0)
        return acc + jnp.sum(ce)

    acc = lax.fori_loop(0, nch, body, jnp.zeros((), f32))

    # Per-tile partial sum at element [0,0] of this tile's private (8,128) block.
    sub = lax.broadcasted_iota(jnp.int32, (8, 128), 0)
    lane = lax.broadcasted_iota(jnp.int32, (8, 128), 1)
    psum_ref[...] = jnp.where((sub == 0) & (lane == 0), acc, 0.0).astype(f32)


# ----------------------------------------------------------------------------
# Pass 2: finalize — partial-sum reduce + KL / MSE / cond / info-NCE / penalties
# ----------------------------------------------------------------------------
def _finalize_kernel(beta_ref, psum_ref,
                     mu_q_ref, lv_q_ref, mu_p_ref, lv_p_ref,
                     ppm_ref, tp_ref, ppz_ref, w_ref, b_ref, eps_ref,
                     out_ref, *, B, D, P, fb, prop_w, nce_w, spq_w, spp_w,
                     imb_w, temperature):
    f32 = jnp.float32

    recon = jnp.sum(psum_ref[...]) / B                        # CE(sum) / B

    mu_q = mu_q_ref[...]
    lv_q = lv_q_ref[...]
    mu_p = mu_p_ref[...]
    lv_p = lv_p_ref[...]

    # KL( N(mu_q, e^{lv_q/2}) || N(mu_p, e^{lv_p/2}) ) per-dim, free-bits clamp
    # applied BEFORE the diagnostics (matches the PyTorch reference).
    kld = (0.5 * (lv_p - lv_q)
           + (jnp.exp(lv_q) + (mu_q - mu_p) ** 2) / (2.0 * jnp.exp(lv_p))
           - 0.5)
    if fb > 0.0:
        kld = jnp.maximum(kld, fb)
    kld_sample = jnp.sum(kld)                                 # sum(-1).sum(-1).mean() for [B,D]
    kld_per_token = kld_sample / B
    kld_raw = kld_sample / (B * D)
    kl_term = beta_ref[0] * kld_per_token

    # Property MSE losses (padded columns are zero on both sides -> contribute 0).
    tp = tp_ref[...]
    plm = jnp.sum((ppm_ref[...] - tp) ** 2) / (B * P)
    plz = jnp.sum((ppz_ref[...] - tp) ** 2) / (B * P)

    # cond = relu(Linear(3, 64)(true_prop))
    cond = jnp.dot(tp, w_ref[...], preferred_element_type=f32)
    cond = jnp.maximum(cond + b_ref[...], 0.0)                # [B, H]

    # reparameterize + info-NCE
    z = mu_q + eps_ref[...] * jnp.exp(0.5 * lv_q)             # [B, D]
    zn = z / jnp.maximum(jnp.sqrt(jnp.sum(z * z, -1, keepdims=True)), 1e-12)
    cn = cond / jnp.maximum(
        jnp.sqrt(jnp.sum(cond * cond, -1, keepdims=True)), 1e-12)
    sim = lax.dot_general(zn, cn, (((1,), (1,)), ((), ())),
                          preferred_element_type=f32) / temperature     # [B, B]
    sm = jnp.max(sim, axis=-1, keepdims=True)
    sim_lse = sm + jnp.log(jnp.sum(jnp.exp(sim - sm), axis=-1, keepdims=True))
    ii = lax.broadcasted_iota(jnp.int32, sim.shape, 0)
    jj = lax.broadcasted_iota(jnp.int32, sim.shape, 1)
    diag = jnp.sum(jnp.where(ii == jj, sim, 0.0), axis=-1, keepdims=True)
    info_nce = jnp.mean(sim_lse - diag)

    # penalties
    imb = jnp.mean((kld - kld_raw) ** 2)
    spq = jnp.mean(jnp.exp(lv_q))
    spp = jnp.mean(jnp.exp(lv_p))

    loss = (recon + kl_term
            + prop_w * (plm + 0.5 * plz)
            + nce_w * info_nce
            + spq_w * spq + spp_w * spp
            + imb_w * imb)

    # pack the 5 scalars into one lane-contiguous (1, 8) store
    lane = lax.broadcasted_iota(jnp.int32, (1, 8), 1)
    packed = (loss * (lane == 0).astype(f32)
              + recon * (lane == 1).astype(f32)
              + kld_sample * (lane == 2).astype(f32)
              + kld_raw * (lane == 3).astype(f32)
              + plm * (lane == 4).astype(f32))
    out_ref[...] = packed


# ----------------------------------------------------------------------------
# Wrapper
# ----------------------------------------------------------------------------
def cvae_lstm_loss(logits, target_tokens, mu_q, lv_q, mu_p, lv_p,
                   prop_pred_mu, true_prop, prop_pred_z, step, eps,
                   proj_w, proj_b, *,
                   max_beta=1.0, anneal_steps=1000, free_bits=0.02,
                   prop_w=1.0, nce=0.02, sig_pen_q=0.003, sig_pen_p=0.003,
                   imb=0.05, temperature=0.2):
    B, L, V = logits.shape
    D = mu_q.shape[-1]
    P = true_prop.shape[-1]
    H = proj_w.shape[0]
    Ppad = 8                       # pad tiny prop dim (3) -> 8 for sane layout

    BL = B * L
    itemsize = jnp.dtype(logits.dtype).itemsize
    sub = max(8, 32 // itemsize)   # sublane packing: 8 (f32), 16 (bf16), 32 (i8/fp8)

    # ---- generation-aware tile / VMEM budget --------------------------------
    vmem_cap = _vmem_capacity_bytes()
    if vmem_cap >= 100 * 2**20:            # v5e / v6e: 128 MiB VMEM
        target_tile_bytes = 14 * 2**20
        vmem_limit_cap = 96 * 2**20
    else:                                  # v7x: 64 MiB VMEM
        target_tile_bytes = 5 * 2**20
        vmem_limit_cap = 40 * 2**20

    # Row chunk inside a tile: keeps the f32 working set ~512 KiB per step.
    CH = max(sub, min(512, (512 * 1024) // max(1, V * 4)))
    CH = max(sub, (CH // sub) * sub)
    CH = min(CH, _round_up(BL, sub))

    # Tile rows T: multiple of CH, fills the per-buffer byte budget (no
    # artificial 1024-row cap), never larger than the padded row count.
    T = target_tile_bytes // max(1, V * itemsize)
    T = max(CH, (T // CH) * CH)
    T = min(T, _round_up(BL, CH))
    BL_pad = _round_up(BL, T)
    num_tiles = BL_pad // T

    # Logits stay in native dtype (bf16 halves DMA bytes); upcast is in-kernel.
    logits2d = logits.reshape(BL, V)
    tgt2d = target_tokens.reshape(BL, 1).astype(jnp.int32)
    if BL_pad != BL:
        logits2d = jnp.pad(logits2d, ((0, BL_pad - BL), (0, 0)))
        tgt2d = jnp.pad(tgt2d, ((0, BL_pad - BL), (0, 0)))

    tile_in_bytes = T * V * itemsize + T * 4
    ch_f32_bytes = 4 * CH * V * 4          # upcast / exp / one-hot select + slack
    vmem_limit = int(min(vmem_limit_cap,
                         max(16 * 2**20,
                             2 * tile_in_bytes + ch_f32_bytes + 4 * 2**20)))

    ce_kernel = functools.partial(_ce_partial_kernel,
                                  T=T, CH=CH, BL=BL, BL_pad=BL_pad)
    ce_cost = pl.CostEstimate(
        flops=int(6 * BL_pad * V),
        transcendentals=int(BL_pad * V),
        bytes_accessed=int(BL_pad * V * itemsize + BL_pad * 4
                           + num_tiles * 8 * 128 * 4))

    partials = pl.pallas_call(
        ce_kernel,
        out_shape=jax.ShapeDtypeStruct((num_tiles * 8, 128), jnp.float32),
        grid=(num_tiles,),
        in_specs=[pl.BlockSpec((T, V), lambda i: (i, 0)),
                  pl.BlockSpec((T, 1), lambda i: (i, 0))],
        out_specs=pl.BlockSpec((8, 128), lambda i: (i, 0)),
        compiler_params=pltpu.CompilerParams(
            dimension_semantics=("parallel",),     # no cross-iteration state
            vmem_limit_bytes=vmem_limit),
        cost_estimate=ce_cost,
    )(logits2d, tgt2d)

    # ---- once-only finalize --------------------------------------------------
    f32 = jnp.float32
    pad_prop = lambda a: jnp.pad(a.astype(f32), ((0, 0), (0, Ppad - P)))
    tp_pad = pad_prop(true_prop)
    ppm_pad = pad_prop(prop_pred_mu)
    ppz_pad = pad_prop(prop_pred_z)
    w_pad = jnp.pad(proj_w.T.astype(f32), ((0, Ppad - P), (0, 0)))   # [Ppad, H]
    b2 = proj_b.astype(f32).reshape(1, -1)

    beta = jnp.minimum(
        jnp.float32(max_beta),
        jnp.float32(max_beta) * jnp.asarray(step, f32) / anneal_steps).reshape(1)

    fin_kernel = functools.partial(
        _finalize_kernel, B=B, D=D, P=P, fb=free_bits, prop_w=prop_w,
        nce_w=nce, spq_w=sig_pen_q, spp_w=sig_pen_p, imb_w=imb,
        temperature=temperature)

    smem = pl.BlockSpec(memory_space=pltpu.MemorySpace.SMEM)
    res = lambda shape: pl.BlockSpec(shape, lambda i: (0, 0))

    outs = pl.pallas_call(
        fin_kernel,
        out_shape=jax.ShapeDtypeStruct((1, 8), jnp.float32),
        grid=(1,),
        in_specs=[smem,
                  res((num_tiles * 8, 128)),
                  res((B, D)), res((B, D)), res((B, D)), res((B, D)),
                  res((B, Ppad)), res((B, Ppad)), res((B, Ppad)),
                  res((Ppad, H)), res((1, H)), res((B, D))],
        out_specs=pl.BlockSpec((1, 8), lambda i: (0, 0)),
        compiler_params=pltpu.CompilerParams(
            dimension_semantics=("arbitrary",)),
    )(beta, partials,
      mu_q.astype(f32), lv_q.astype(f32), mu_p.astype(f32), lv_p.astype(f32),
      ppm_pad, tp_pad, ppz_pad, w_pad, b2, eps.astype(f32))

    loss = outs[0, 0]
    recon = outs[0, 1]
    kld_sample = outs[0, 2]
    kld_raw = outs[0, 3]
    prop_loss_mu = outs[0, 4]
    return loss, recon, kld_sample, kld_raw, prop_loss_mu


if __name__ == "__main__":
    key = jax.random.PRNGKey(0)
    ks = jax.random.split(key, 12)

    B, L, V, D, P = 8, 8, 128, 64, 3   # latent D must equal proj out dim (64)

    logits = jax.random.normal(ks[0], (B, L, V), jnp.float32)
    target_tokens = jax.random.randint(ks[1], (B, L), 0, V, jnp.int32)
    mu_q = 0.5 * jax.random.normal(ks[2], (B, D), jnp.float32)
    lv_q = 0.1 * jax.random.normal(ks[3], (B, D), jnp.float32)
    mu_p = 0.5 * jax.random.normal(ks[4], (B, D), jnp.float32)
    lv_p = 0.1 * jax.random.normal(ks[5], (B, D), jnp.float32)
    true_prop = jax.random.normal(ks[6], (B, P), jnp.float32)
    prop_pred_mu = true_prop + 0.1 * jax.random.normal(ks[7], (B, P), jnp.float32)
    prop_pred_z = true_prop + 0.1 * jax.random.normal(ks[8], (B, P), jnp.float32)

    # host-side Gaussian noise for reparameterize (see TODO above)
    eps = jax.random.normal(ks[9], (B, D), jnp.float32)

    # nn.Linear(3, 64) params (~PyTorch default U(-1/sqrt(3), 1/sqrt(3)))
    bound = 1.0 / (3.0 ** 0.5)
    proj_w = jax.random.uniform(ks[10], (64, P), jnp.float32, -bound, bound)
    proj_b = jax.random.uniform(ks[11], (64,), jnp.float32, -bound, bound)

    step = 500

    out = cvae_lstm_loss(logits, target_tokens, mu_q, lv_q, mu_p, lv_p,
                         prop_pred_mu, true_prop, prop_pred_z, step, eps,
                         proj_w, proj_b)
    out = jax.block_until_ready(out)
    print("KERNEL_OK")
</pallas_src>

<mosaic_0001>
module attributes {stable_mosaic.version = 11 : i64} {
  func.func @_ce_partial_kernel(%arg0: i32, %arg1: memref<64x128xf32, #tpu.memory_space<vmem>>, %arg2: memref<64x1xi32, #tpu.memory_space<vmem>>, %arg3: memref<8x128xf32, #tpu.memory_space<vmem>>) attributes {dimension_semantics = [#tpu.dimension_semantics<parallel>], iteration_bounds = array<i64: 1>, scalar_prefetch = 0 : i64, scratch_operands = 0 : i64, tpu.core_type = #tpu.core_type<tc>, window_params = [{transform_indices = @transform_0, window_bounds = array<i64: 64, 128>}, {transform_indices = @transform_1, window_bounds = array<i64: 64, 1>}, {transform_indices = @transform_2, window_bounds = array<i64: 8, 128>}]} {
    %cst = arith.constant 0.000000e+00 : f32
    %c0_i32 = arith.constant 0 : i32
    %c64_i32 = arith.constant 64 : i32
    %0 = arith.muli %c0_i32, %c64_i32 : i32
    %1 = tpu.assume_multiple %0, 64 : i32
    %2 = arith.index_cast %1 : i32 to index
    %c0 = arith.constant 0 : index
    %3 = vector.load %arg1[%2, %c0] : memref<64x128xf32, #tpu.memory_space<vmem>>, vector<64x128xf32>
    %4 = arith.index_cast %1 : i32 to index
    %c0_0 = arith.constant 0 : index
    %5 = vector.load %arg2[%4, %c0_0] : memref<64x1xi32, #tpu.memory_space<vmem>>, vector<64x1xi32>
    %cst_1 = arith.constant dense<0xFF800000> : vector<64xf32>
    %6 = vector.multi_reduction <maximumf>, %3, %cst_1 [1] : vector<64x128xf32> to vector<64xf32>
    %7 = vector.shape_cast %6 : vector<64xf32> to vector<64x1xf32>
    %8 = vector.broadcast %7 : vector<64x1xf32> to vector<64x128xf32>
    %9 = arith.subf %3, %8 : vector<64x128xf32>
    %10 = math.exp %9 : vector<64x128xf32>
    %cst_2 = arith.constant dense<0.000000e+00> : vector<64xf32>
    %11 = vector.multi_reduction <add>, %10, %cst_2 [1] : vector<64x128xf32> to vector<64xf32>
    %12 = vector.shape_cast %11 : vector<64xf32> to vector<64x1xf32>
    %13 = math.log %12 : vector<64x1xf32>
    %14 = tpu.iota {dimensions = array<i32: 1>} : vector<64x128xi32>
    %15 = vector.broadcast %5 : vector<64x1xi32> to vector<64x128xi32>
    %16 = arith.cmpi eq, %14, %15 : vector<64x128xi32>
    %cst_3 = arith.constant 0.000000e+00 : f32
    %17 = vector.broadcast %cst_3 : f32 to vector<64x128xf32>
    %18 = arith.select %16, %9, %17 : vector<64x128xi1>, vector<64x128xf32>
    %cst_4 = arith.constant dense<0.000000e+00> : vector<64xf32>
    %19 = vector.multi_reduction <add>, %18, %cst_4 [1] : vector<64x128xf32> to vector<64xf32>
    %20 = vector.shape_cast %19 : vector<64xf32> to vector<64x1xf32>
    %21 = arith.subf %13, %20 : vector<64x1xf32>
    %22 = vector.shape_cast %21 : vector<64x1xf32> to vector<1x64x1xf32>
    %cst_5 = arith.constant dense<0.000000e+00> : vector<1xf32>
    %23 = vector.multi_reduction <add>, %22, %cst_5 [1, 2] : vector<1x64x1xf32> to vector<1xf32>
    %24 = vector.shape_cast %23 : vector<1xf32> to vector<1x1x1xf32>
    %25 = vector.extract %24[0, 0, 0] : f32 from vector<1x1x1xf32>
    %26 = arith.addf %cst, %25 : f32
    %c1_i32 = arith.constant 1 : i32
    %27 = tpu.iota {dimensions = array<i32: 0>} : vector<8x128xi32>
    %28 = tpu.iota {dimensions = array<i32: 1>} : vector<8x128xi32>
    %c0_i32_6 = arith.constant 0 : i32
    %29 = vector.broadcast %c0_i32_6 : i32 to vector<8x128xi32>
    %30 = arith.cmpi eq, %27, %29 : vector<8x128xi32>
    %c0_i32_7 = arith.constant 0 : i32
    %31 = vector.broadcast %c0_i32_7 : i32 to vector<8x128xi32>
    %32 = arith.cmpi eq, %28, %31 : vector<8x128xi32>
    %33 = arith.andi %30, %32 : vector<8x128xi1>
    %cst_8 = arith.constant 0.000000e+00 : f32
    %34 = vector.broadcast %26 : f32 to vector<8x128xf32>
    %35 = vector.broadcast %cst_8 : f32 to vector<8x128xf32>
    %36 = arith.select %33, %34, %35 : vector<8x128xi1>, vector<8x128xf32>
    %c0_9 = arith.constant 0 : index
    %c0_10 = arith.constant 0 : index
    %37 = vector.load %arg3[%c0_9, %c0_10] : memref<8x128xf32, #tpu.memory_space<vmem>>, vector<8x128xf32>
    tpu.vector_store %arg3[%c0_9, %c0_10], %36 {strides = array<i32>} : memref<8x128xf32, #tpu.memory_space<vmem>>, vector<8x128xf32>,
    return
  }
  func.func @transform_0(%arg0: i32) -> (i32, i32) {
    %c0_i32 = arith.constant 0 : i32
    %c0_i32_0 = arith.constant 0 : i32
    return %arg0, %c0_i32 : i32, i32
  }
  func.func @transform_1(%arg0: i32) -> (i32, i32) {
    %c0_i32 = arith.constant 0 : i32
    %c0_i32_0 = arith.constant 0 : i32
    return %arg0, %c0_i32 : i32, i32
  }
  func.func @transform_2(%arg0: i32) -> (i32, i32) {
    %c0_i32 = arith.constant 0 : i32
    %c0_i32_0 = arith.constant 0 : i32
    return %arg0, %c0_i32 : i32, i32
  }
}

</mosaic_0001>

<bundles_post_ra>
// kernel: tpu_custom_call.1
= control target key start
LH: loop header
LB: loop body
LE: loop exit
PB: predicated region body
PF: predicated region fallthrough
CT: control target
= control target key end

     0   :  { %v281_v3 = vmov 0   ;;  %s382_s0 = inlined_call_operand.vmem [shape: f32[64,128], index: 0, kind: input, shape index: {}]   ;;  %s383_s1 = inlined_call_operand.vmem [shape: s32[64,1], index: 1, kind: input, shape index: {}]   ;;  %s384_s2 = inlined_call_operand.hbm [shape: f32[8,128], index: 2, kind: output, shape index: {}]  }
   0x1   :  { %v301_v0 = vld [vmem:[%s382_s0 + $0x20] sm:$0xff]  ;;  %v14_v1 = vld [vmem:[%s382_s0 + $0x10] sm:$0xff]  ;;  %220 = vset.pattern.permute.xlu2 %v281_v3  ;;  %221 = vset.pattern.permute.xlu0 %v281_v3 }
   0x2   :  { %v12_v2 = vld [vmem:[%s382_s0] sm:$0xff]  ;;  %36 = vmax.xlane.f32.xlu2 %v301_v0  ;;  %32 = vmax.xlane.f32.xlu1 %v14_v1 }
   0x3   :  { %28 = vmax.xlane.f32.xlu0 %v12_v2  ;;  %222 = vset.pattern.permute.xlu1 %v281_v3 }
   0x4   :  { %7 = vsyncpa [#allocation3], 0  ;;  %v17_v4 = vld [vmem:[%s382_s0 + $0x28] sm:$0xff]  ;;  %v15_v5 = vld [vmem:[%s382_s0 + $0x18] sm:$0xff]  ;;  %v100_v25 = vlaneseq  ;;  %vm166_vm8 = vcmask 7168   ;;  %s207_s15 = sshll.u32 %s384_s2, 4  ;;  %s208_s15 = int_to_ptr.hbm [resolvable:$true] %s207_s15 }
   0x5   :  { %v13_v6 = vld [vmem:[%s382_s0 + $0x8] sm:$0xff]  ;;  %v322_v7 = vld [vmem:[%s382_s0 + $0x38] sm:$0xff]  ;;  %v18_v8 = vld [vmem:[%s382_s0 + $0x30] sm:$0xff] }
   0x6   :  { %v20_v9 = vld [vmem:[%s383_s1] sm:$0xff]  ;;  %v21_v10 = vld [vmem:[%s383_s1 + $0x8] sm:$0xff]  ;;  %v23_v11 = vld [vmem:[%s383_s1 + $0x18] sm:$0xff]  ;;  %v356_v29 = vand.u32 127, %v100_v25 }
   0x7   :  { %v22_v12 = vld [vmem:[%s383_s1 + $0x10] sm:$0xff]  ;;  %v24_v13 = vld [vmem:[%s383_s1 + $0x20] sm:$0xff]  ;;  %v25_v14 = vld [vmem:[%s383_s1 + $0x28] sm:$0xff] }
   0x8   :  { %v26_v15 = vld [vmem:[%s383_s1 + $0x30] sm:$0xff]  ;;  %v27_v16 = vld [vmem:[%s383_s1 + $0x38] sm:$0xff]  ;;  %vm195_vm10 = vcmp.eq.s32.totalorder %v356_v29, 0  ;;  %s282_s1 = smov [#allocation2]  }
   0x9   :  { %s205_s12 = sshll.u32 %s282_s1, 4  ;;  %s206_s12 = int_to_ptr.vmem [resolvable:$true] %s205_s12 }
   0xa   :  { %38 = vmax.xlane.f32.xlu2 %v17_v4  ;;  %34 = vmax.xlane.f32.xlu1 %v15_v5 }
   0xb   :  { %30 = vmax.xlane.f32.xlu0 %v13_v6 }
  0x12   :  { %42 = vmax.xlane.f32.xlu1 %v322_v7 }
  0x13   :  { %40 = vmax.xlane.f32.xlu0 %v18_v8 }
  0x22   :  { %103 = vperm.xlu2 %220, %v20_v9  }
  0x27   :  { %106 = vperm.xlu0 %221, %v21_v10  }
  0x2a   :  { %112 = vperm.xlu2 %220, %v23_v11  }
  0x2b   :  { %109 = vperm.xlu1 %222, %v22_v12  }
  0x32   :  { %115 = vperm.xlu2 %220, %v24_v13  }
  0x33   :  { %118 = vperm.xlu1 %222, %v25_v14  }
  0x3a   :  { %121 = vperm.xlu2 %220, %v26_v15  }
  0x3b   :  { %124 = vperm.xlu1 %222, %v27_v16  }
  0x75   :  { %v37_v17 = vpop.xlane.xlu2 %36  ;;  %v33_v18 = vpop.xlane.xlu1 %32 }
  0x76   :  { %v46_v19 = vsub.f32 %v14_v1, %v33_v18  ;;  %v29_v20 = vpop.xlane.xlu0 %28  ;;  %v48_v51 = vsub.f32 %v301_v0, %v37_v17 }
  0x77   :  { %v44_v31 = vsub.f32 %v12_v2, %v29_v20 }
  0x78   :  { %v56_v21 = vmul.f32 1.442695, %v46_v19  ;;  %v60_v56 = vmul.f32 1.442695, %v48_v51 }
  0x79   :  { %v52_v47 = vmul.f32 1.442695, %v44_v31 }
  0x7a   :  { %223 = vpow2.f32 %v56_v21 }
  0x7d   :  { %v39_v22 = vpop.xlane.xlu2 %38  ;;  %v35_v30 = vpop.xlane.xlu1 %34 }
  0x7e   :  { %v352_v23 = vsub.f32 %v17_v4, %v39_v22  ;;  %v31_v24 = vpop.xlane.xlu0 %30  ;;  %v47_v37 = vsub.f32 %v15_v5, %v35_v30 }
  0x7f   :  { %v45_v28 = vsub.f32 %v13_v6, %v31_v24 }
  0x80   :  { %v62_v26 = vmul.f32 1.442695, %v352_v23  ;;  %v224_v27 = vpop.eup %223  ;;  %v58_v40 = vmul.f32 1.442695, %v47_v37 }
  0x81   :  { %72 = vadd.xlane.f32.xlu1 %v224_v27  ;;  %v54_v32 = vmul.f32 1.442695, %v45_v28 }
  0x82   :  { %225 = vpow2.f32 %v62_v26 }
  0x83   :  { %227 = vpow2.f32 %v54_v32 }
  0x85   :  { %v104_v33 = vpop.permute.xlu2 %103  ;;  %v43_v44 = vpop.xlane.xlu1 %42 }
  0x86   :  { %vm126_vm0 = vcmp.eq.s32.totalorder %v356_v29, %v104_v33  ;;  %v41_v34 = vpop.xlane.xlu0 %40  ;;  %v51_v58 = vsub.f32 %v322_v7, %v43_v44 }
  0x87   :  { %v50_v35 = vsub.f32 %v18_v8, %v41_v34  ;;  %v134_v36 = vsel %vm126_vm0, %v44_v31, 0.0 }
  0x88   :  { %v226_v38 = vpop.eup %225  ;;  %142 = vadd.xlane.f32.xlu2 %v134_v36  ;;  %v66_v61 = vmul.f32 1.442695, %v51_v58 }
  0x89   :  { %v64_v39 = vmul.f32 1.442695, %v50_v35  ;;  %78 = vadd.xlane.f32.xlu1 %v226_v38  ;;  %v228_v42 = vpop.eup %227 }
  0x8b   :  { %229 = vpow2.f32 %v64_v39 }
  0x8c   :  { %231 = vpow2.f32 %v58_v40 }
  0x8d   :  { %v113_v41 = vpop.permute.xlu2 %112  ;;  %233 = vpow2.f32 %v52_v47 }
  0x8e   :  { %vm129_vm1 = vcmp.eq.s32.totalorder %v356_v29, %v113_v41  ;;  %235 = vpow2.f32 %v60_v56 }
  0x8f   :  { %v137_v49 = vsel %vm129_vm1, %v47_v37, 0.0  ;;  %237 = vpow2.f32 %v66_v61 }
  0x90   :  { %70 = vadd.xlane.f32.xlu2 %v228_v42 }
  0x91   :  { %v230_v43 = vpop.eup %229 }
  0x92   :  { %80 = vadd.xlane.f32.xlu1 %v230_v43  ;;  %v232_v45 = vpop.eup %231 }
  0x93   :  { %v234_v57 = vpop.eup %233 }
  0x94   :  { %v236_v62 = vpop.eup %235 }
  0x95   :  { %v116_v46 = vpop.permute.xlu2 %115  ;;  %v238_v1 = vpop.eup %237 }
  0x96   :  { %vm130_vm5 = vcmp.eq.s32.totalorder %v356_v29, %v116_v46 }
  0x97   :  { %v138_v60 = vsel %vm130_vm5, %v48_v51, 0.0 }
  0x98   :  { %74 = vadd.xlane.f32.xlu2 %v232_v45 }
  0x99   :  { %v107_v48 = vpop.permute.xlu0 %106 }
  0x9a   :  { %vm127_vm2 = vcmp.eq.s32.totalorder %v356_v29, %v107_v48  ;;  %148 = vadd.xlane.f32.xlu1 %v137_v49 }
  0x9b   :  { %v135_v50 = vsel %vm127_vm2, %v45_v28, 0.0 }
  0x9c   :  { %144 = vadd.xlane.f32.xlu0 %v135_v50 }
  0x9d   :  { %v122_v52 = vpop.permute.xlu2 %121  ;;  %v110_v53 = vpop.permute.xlu1 %109 }
  0x9e   :  { %vm132_vm3 = vcmp.eq.s32.totalorder %v356_v29, %v122_v52  ;;  %vm128_vm4 = vcmp.eq.s32.totalorder %v356_v29, %v110_v53 }
  0x9f   :  { %v136_v54 = vsel %vm128_vm4, %v46_v19, 0.0  ;;  %v140_v55 = vsel %vm132_vm3, %v50_v35, 0.0 }
  0xa0   :  { %146 = vadd.xlane.f32.xlu2 %v136_v54 }
  0xa2   :  { %154 = vadd.xlane.f32.xlu1 %v140_v55 }
  0xa4   :  { %68 = vadd.xlane.f32.xlu0 %v234_v57 }
  0xa5   :  { %v119_v59 = vpop.permute.xlu1 %118 }
  0xa6   :  { %vm131_vm7 = vcmp.eq.s32.totalorder %v356_v29, %v119_v59 }
  0xa7   :  { %v139_v2 = vsel %vm131_vm7, %v352_v23, 0.0 }
  0xa8   :  { %150 = vadd.xlane.f32.xlu2 %v138_v60 }
  0xac   :  { %76 = vadd.xlane.f32.xlu0 %v236_v62 }
  0xad   :  { %v125_v63 = vpop.permute.xlu1 %124 }
  0xae   :  { %vm133_vm6 = vcmp.eq.s32.totalorder %v356_v29, %v125_v63 }
  0xaf   :  { %v141_v0 = vsel %vm133_vm6, %v51_v58, 0.0 }
  0xb0   :  { %156 = vadd.xlane.f32.xlu2 %v141_v0 }
  0xb4   :  { %82 = vadd.xlane.f32.xlu0 %v238_v1 }
  0xbc   :  { %152 = vadd.xlane.f32.xlu0 %v139_v2 }
  0xf4   :  { %v73_v4 = vpop.xlane.xlu1 %72 }
  0xfb   :  { %v143_v3 = vpop.xlane.xlu2 %142 }
  0xfc   :  { %v79_v6 = vpop.xlane.xlu1 %78 }
 0x103   :  { %v71_v5 = vpop.xlane.xlu2 %70 }
 0x104   :  { %239 = vlog2.f32 %v71_v5 }
 0x105   :  { %v81_v10 = vpop.xlane.xlu1 %80 }
 0x10a   :  { %v240_v11 = vpop.eup %239 }
 0x10b   :  { %v75_v8 = vpop.xlane.xlu2 %74  ;;  %v87_v16 = vmul.f32 0.6931472, %v240_v11 }
 0x10d   :  { %v149_v21 = vpop.xlane.xlu1 %148 }
 0x10f   :  { %v145_v7 = vpop.xlane.xlu0 %144 }
 0x110   :  { %v159_v19 = vsub.f32 %v87_v16, %v145_v7 }
 0x112   :  { %v168_v27 = vsel %vm166_vm8, %v159_v19, 0.0 }
 0x113   :  { %v147_v12 = vpop.xlane.xlu2 %146 }
 0x115   :  { %v155_v40 = vpop.xlane.xlu1 %154 }
 0x117   :  { %v69_v9 = vpop.xlane.xlu0 %68 }
 0x118   :  { %241 = vlog2.f32 %v69_v9 }
 0x119   :  { %243 = vlog2.f32 %v73_v4 }
 0x11a   :  { %245 = vlog2.f32 %v75_v8 }
 0x11b   :  { %v151_v31 = vpop.xlane.xlu2 %150 }
 0x11e   :  { %v242_v13 = vpop.eup %241 }
 0x11f   :  { %v85_v14 = vmul.f32 0.6931472, %v242_v13  ;;  %v77_v15 = vpop.xlane.xlu0 %76  ;;  %v244_v17 = vpop.eup %243 }
 0x120   :  { %247 = vlog2.f32 %v77_v15  ;;  %v246_v20 = vpop.eup %245  ;;  %v89_v22 = vmul.f32 0.6931472, %v244_v17 }
 0x121   :  { %v158_v18 = vsub.f32 %v85_v14, %v143_v3  ;;  %249 = vlog2.f32 %v79_v6  ;;  %v91_v26 = vmul.f32 0.6931472, %v246_v20  ;;  %v193_v3 = vshrl.u32 %v100_v25, 7 }
 0x122   :  { %251 = vlog2.f32 %v81_v10  ;;  %v160_v28 = vsub.f32 %v89_v22, %v147_v12 }
 0x123   :  { %v167_v23 = vsel %vm166_vm8, %v158_v18, 0.0  ;;  %v161_v35 = vsub.f32 %v91_v26, %v149_v21  ;;  %v157_v51 = vpop.xlane.xlu2 %156  ;;  %vm194_vm9 = vcmp.eq.s32.totalorder %v193_v3, 0 }
 0x124   :  { %v169_v30 = vadd.f32 %v168_v27, %v167_v23  ;;  %v170_v36 = vsel %vm166_vm8, %v160_v28, 0.0  ;;  %vm196_vm11 = vmand %vm194_vm9, %vm195_vm10 }
 0x125   :  { %v172_v44 = vsel %vm166_vm8, %v161_v35, 0.0 }
 0x126   :  { %v248_v24 = vpop.eup %247  ;;  %v171_v39 = vadd.f32 %v170_v36, %v169_v30 }
 0x127   :  { %v93_v32 = vmul.f32 0.6931472, %v248_v24  ;;  %v83_v33 = vpop.xlane.xlu0 %82  ;;  %v250_v34 = vpop.eup %249 }
 0x128   :  { %253 = vlog2.f32 %v83_v33  ;;  %v252_v38 = vpop.eup %251  ;;  %v95_v42 = vmul.f32 0.6931472, %v250_v34  ;;  %v173_v47 = vadd.f32 %v172_v44, %v171_v39 }
 0x129   :  { %v162_v37 = vsub.f32 %v93_v32, %v151_v31  ;;  %v97_v43 = vmul.f32 0.6931472, %v252_v38 }
 0x12b   :  { %v174_v45 = vsel %vm166_vm8, %v162_v37, 0.0  ;;  %v164_v49 = vsub.f32 %v97_v43, %v155_v40 }
 0x12c   :  { %v175_v52 = vadd.f32 %v174_v45, %v173_v47 }
 0x12d   :  { %v178_v56 = vsel %vm166_vm8, %v164_v49, 0.0 }
 0x12e   :  { %v254_v41 = vpop.eup %253 }
 0x12f   :  { %v99_v46 = vmul.f32 0.6931472, %v254_v41  ;;  %v153_v48 = vpop.xlane.xlu0 %152 }
 0x130   :  { %v163_v50 = vsub.f32 %v95_v42, %v153_v48 }
 0x131   :  { %v165_v53 = vsub.f32 %v99_v46, %v157_v51 }
 0x132   :  { %v176_v54 = vsel %vm166_vm8, %v163_v50, 0.0 }
 0x133   :  { %v177_v55 = vadd.f32 %v176_v54, %v175_v52  ;;  %v180_v58 = vsel %vm166_vm8, %v165_v53, 0.0 }
 0x135   :  { %v179_v57 = vadd.f32 %v178_v56, %v177_v55 }
 0x137   :  { %v181_v59 = vadd.f32 %v180_v58, %v179_v57 }
 0x139   :  { %182 = vadd.xlane.f32.xlu0 %v181_v59 }
 0x1ac   :  { %v183_v60 = vpop.xlane.xlu0 %182 }
 0x1ad   :  { %v184_v61 = vrot.slane %v183_v60, 4 }
 0x1af   :  { %v185_v62 = vadd.f32 %v184_v61, %v183_v60 }
 0x1b1   :  { %v186_v63 = vrot.slane %v185_v62, 2 }
 0x1b3   :  { %v187_v0 = vadd.f32 %v186_v63, %v185_v62 }
 0x1b5   :  { %v188_v1 = vrot.slane %v187_v0, 1 }
 0x1b7   :  { %v189_v2 = vadd.f32 %v188_v1, %v187_v0 }
 0x1b9   :  { %216 = vpush %v189_v2 }
 0x1ea   :  { %s217_s16 = spop %216 }
 0x1eb   :  { %v197_v4 = vstv %s217_s16 }
 0x1ec   :  { %v198_v5 = vsel %vm196_vm11, %v197_v4, 0.0 }
 0x1ed   :  { %199 = vst [vmem:[#allocation2] sm:$0xff] %v198_v5 }
 0x1ee   :  { %210 = dma.vmem_to_hbm [thread:$0]  %s206_s12, 128, %s208_s15, [#allocation3]  }
 0x1ef   :  { %279 = dma.done.wait [#allocation3], 128  }
 0x1f0   :  { %280 = vsyncadd [#allocation3], 4294967168 }
 0x1f1   :  { %215 = vsyncpa [#allocation3], 1 }

</bundles_post_ra>
